<compile_context>
chip_gen: v6e
topology: v6e:2x2x1
jax: 0.10.0
libtpu: 0.0.40
codegen_flags: <defaults>
</compile_context>

<pallas_src>
import functools

import jax
import jax.numpy as jnp
from jax.experimental import pallas as pl
from jax.experimental.pallas import tpu as pltpu


def _self_attention_kernel(x_ref, wqkv_ref, bqkv_ref, o_ref, *,
                           dim_k, dim_v, norm_fact):
    """One batch element per grid step.

    x_ref    : (1, N, D)          input sequence tile (VMEM)
    wqkv_ref : (D, 2*dk + dv)     concatenated [Wq^T | Wk^T | Wv^T] (VMEM, whole)
    bqkv_ref : (1, 2*dk + dv)     concatenated [bq | bk | bv]
    o_ref    : (1, N, dv)         output tile
    """
    x = x_ref[0]                                                       # (N, D)

    # Fused QKV projection — a single MXU matmul with f32 accumulation.
    qkv = jnp.dot(x, wqkv_ref[...],
                  preferred_element_type=jnp.float32) + bqkv_ref[...]  # (N, 2dk+dv)

    q = qkv[:, :dim_k]                                                 # (N, dk)
    k = qkv[:, dim_k:2 * dim_k]                                        # (N, dk)
    v = qkv[:, 2 * dim_k:2 * dim_k + dim_v]                            # (N, dv)

    # scores = Q @ K^T without materializing a transposed copy of K.
    scores = jax.lax.dot_general(
        q, k, (((1,), (1,)), ((), ())),
        preferred_element_type=jnp.float32)                            # (N, N)

    # Numerically stable softmax over the last axis (matches nn.Softmax(dim=-1)).
    m = jnp.max(scores, axis=-1, keepdims=True)
    e = jnp.exp(scores - m)
    denom = jnp.sum(e, axis=-1, keepdims=True)
    # The PyTorch module applies 1/sqrt(dim_k) AFTER the softmax; fold that
    # scalar into the per-row reciprocal so it costs a (N,1) multiply only.
    atten = e * (norm_fact * pl.reciprocal(denom, approx=False))       # (N, N)

    out = jnp.dot(atten, v, preferred_element_type=jnp.float32)        # (N, dv)
    o_ref[...] = out[None].astype(o_ref.dtype)


def self_attention(x, wq, bq, wk, bk, wv, bv):
    """x: (B, N, input_dim) f32. PyTorch Linear params: w*: (out, in), b*: (out,)."""
    B, N, D = x.shape
    dim_k = wq.shape[0]
    dim_v = wv.shape[0]
    norm_fact = 1.0 / (dim_k ** 0.5)

    # One-time glue (outside the hot loop): transpose the Linear weights so the
    # kernel does a plain x @ W, and concatenate Q/K/V params so the kernel
    # issues a single projection matmul + a single bias add.
    wqkv = jnp.concatenate(
        [jnp.asarray(wq, jnp.float32).T,            # (D, dim_k)
         jnp.asarray(wk, jnp.float32).T,            # (D, dim_k)
         jnp.asarray(wv, jnp.float32).T],           # (D, dim_v)
        axis=1)                                     # (D, 2*dim_k + dim_v)
    bqkv = jnp.concatenate(
        [jnp.asarray(bq, jnp.float32),
         jnp.asarray(bk, jnp.float32),
         jnp.asarray(bv, jnp.float32)]).reshape(1, 2 * dim_k + dim_v)

    kernel = functools.partial(_self_attention_kernel,
                               dim_k=dim_k, dim_v=dim_v, norm_fact=norm_fact)

    qkv_w = 2 * dim_k + dim_v
    return pl.pallas_call(
        kernel,
        out_shape=jax.ShapeDtypeStruct((B, N, dim_v), jnp.float32),
        grid_spec=pltpu.PrefetchScalarGridSpec(
            num_scalar_prefetch=0,
            grid=(B,),
            in_specs=[
                pl.BlockSpec((1, N, D), lambda b: (b, 0, 0)),       # x
                pl.BlockSpec((D, qkv_w), lambda b: (0, 0)),         # [Wq^T|Wk^T|Wv^T]
                pl.BlockSpec((1, qkv_w), lambda b: (0, 0)),         # [bq|bk|bv]
            ],
            out_specs=pl.BlockSpec((1, N, dim_v), lambda b: (b, 0, 0)),
        ),
        compiler_params=pltpu.CompilerParams(
            dimension_semantics=("parallel",)),      # 2 TCs on v7x when B >= 2
    )(x.astype(jnp.float32), wqkv, bqkv)


def _reference(x, wq, bq, wk, bk, wv, bv):
    """Pure-JAX reference matching the PyTorch module exactly."""
    dim_k = wq.shape[0]
    Q = jnp.einsum("bnd,kd->bnk", x, wq) + bq
    K = jnp.einsum("bnd,kd->bnk", x, wk) + bk
    V = jnp.einsum("bnd,vd->bnv", x, wv) + bv
    scores = jnp.einsum("bnk,bmk->bnm", Q, K)
    atten = jax.nn.softmax(scores, axis=-1) * (1.0 / (dim_k ** 0.5))
    return jnp.einsum("bnm,bmv->bnv", atten, V)


if __name__ == "__main__":
    # Small shapes consistent with the module: batch=2, seq=8, hidden=32.
    B, N, input_dim, dim_k, dim_v = 2, 8, 32, 32, 32

    key = jax.random.PRNGKey(0)
    kx, kwq, kbq, kwk, kbk, kwv, kbv = jax.random.split(key, 7)

    x = jax.random.normal(kx, (B, N, input_dim), dtype=jnp.float32)

    # nn.Linear default init: U(-1/sqrt(in_features), 1/sqrt(in_features))
    bound = 1.0 / (input_dim ** 0.5)
    wq = jax.random.uniform(kwq, (dim_k, input_dim), jnp.float32, -bound, bound)
    bq = jax.random.uniform(kbq, (dim_k,), jnp.float32, -bound, bound)
    wk = jax.random.uniform(kwk, (dim_k, input_dim), jnp.float32, -bound, bound)
    bk = jax.random.uniform(kbk, (dim_k,), jnp.float32, -bound, bound)
    wv = jax.random.uniform(kwv, (dim_v, input_dim), jnp.float32, -bound, bound)
    bv = jax.random.uniform(kbv, (dim_v,), jnp.float32, -bound, bound)

    out = self_attention(x, wq, bq, wk, bk, wv, bv)
    jax.block_until_ready(out)

    ref = _reference(x, wq, bq, wk, bk, wv, bv)
    assert out.shape == (B, N, dim_v)
    assert jnp.allclose(out, ref, atol=1e-5, rtol=1e-5), (
        float(jnp.max(jnp.abs(out - ref))))

    print("KERNEL_OK")
</pallas_src>

<mosaic_0001>
module attributes {stable_mosaic.version = 11 : i64} {
  func.func @_self_attention_kernel(%arg0: i32, %arg1: memref<1x8x32xf32, #tpu.memory_space<vmem>>, %arg2: memref<32x96xf32, #tpu.memory_space<vmem>>, %arg3: memref<1x96xf32, #tpu.memory_space<vmem>>, %arg4: memref<1x8x32xf32, #tpu.memory_space<vmem>>) attributes {dimension_semantics = [#tpu.dimension_semantics<parallel>], iteration_bounds = array<i64: 2>, scalar_prefetch = 0 : i64, scratch_operands = 0 : i64, tpu.core_type = #tpu.core_type<tc>, window_params = [{transform_indices = @transform_0, window_bounds = array<i64: 1, 8, 32>}, {pipeline_mode = #tpu.pipeline_mode<synchronous>, transform_indices = @transform_1, window_bounds = array<i64: 32, 96>}, {pipeline_mode = #tpu.pipeline_mode<synchronous>, transform_indices = @transform_2, window_bounds = array<i64: 1, 96>}, {transform_indices = @transform_3, window_bounds = array<i64: 1, 8, 32>}]} {
    %c0 = arith.constant 0 : index
    %c0_0 = arith.constant 0 : index
    %c0_1 = arith.constant 0 : index
    %0 = vector.load %arg1[%c0, %c0_0, %c0_1] : memref<1x8x32xf32, #tpu.memory_space<vmem>>, vector<1x8x32xf32>
    %1 = vector.shape_cast %0 : vector<1x8x32xf32> to vector<8x32xf32>
    %c0_2 = arith.constant 0 : index
    %c0_3 = arith.constant 0 : index
    %2 = vector.load %arg2[%c0_2, %c0_3] : memref<32x96xf32, #tpu.memory_space<vmem>>, vector<32x96xf32>
    %cst = arith.constant dense<0.000000e+00> : vector<8x96xf32>
    %3 = tpu.matmul %1, %2, %cst {dimension_numbers = #tpu.dot_dimension_numbers<[1], [0], [0], [1], [0, 0, 1, 1], [], []>} : vector<8x32xf32>, vector<32x96xf32>, vector<8x96xf32> -> vector<8x96xf32>
    %c0_4 = arith.constant 0 : index
    %c0_5 = arith.constant 0 : index
    %4 = vector.load %arg3[%c0_4, %c0_5] : memref<1x96xf32, #tpu.memory_space<vmem>>, vector<1x96xf32>
    %5 = vector.broadcast %4 : vector<1x96xf32> to vector<8x96xf32>
    %6 = arith.addf %3, %5 : vector<8x96xf32>
    %7 = vector.extract_strided_slice %6 {offsets = [0, 0], sizes = [8, 32], strides = [1, 1]} : vector<8x96xf32> to vector<8x32xf32>
    %8 = vector.extract_strided_slice %6 {offsets = [0, 32], sizes = [8, 32], strides = [1, 1]} : vector<8x96xf32> to vector<8x32xf32>
    %9 = vector.extract_strided_slice %6 {offsets = [0, 64], sizes = [8, 32], strides = [1, 1]} : vector<8x96xf32> to vector<8x32xf32>
    %cst_6 = arith.constant dense<0.000000e+00> : vector<8x8xf32>
    %10 = tpu.matmul %7, %8, %cst_6 {dimension_numbers = #tpu.dot_dimension_numbers<[1], [1], [0], [0], [0, 0, 1, 0], [], []>} : vector<8x32xf32>, vector<8x32xf32>, vector<8x8xf32> -> vector<8x8xf32>
    %cst_7 = arith.constant dense<0xFF800000> : vector<8xf32>
    %11 = vector.multi_reduction <maximumf>, %10, %cst_7 [1] : vector<8x8xf32> to vector<8xf32>
    %12 = vector.shape_cast %11 : vector<8xf32> to vector<8x1xf32>
    %13 = vector.broadcast %12 : vector<8x1xf32> to vector<8x8xf32>
    %14 = arith.subf %10, %13 : vector<8x8xf32>
    %15 = math.exp %14 : vector<8x8xf32>
    %cst_8 = arith.constant dense<0.000000e+00> : vector<8xf32>
    %16 = vector.multi_reduction <add>, %15, %cst_8 [1] : vector<8x8xf32> to vector<8xf32>
    %17 = vector.shape_cast %16 : vector<8xf32> to vector<8x1xf32>
    %18 = tpu.reciprocal %17 : vector<8x1xf32> -> vector<8x1xf32>
    %cst_9 = arith.constant 0.176776692 : f32
    %19 = vector.broadcast %cst_9 : f32 to vector<8x1xf32>
    %20 = arith.mulf %19, %18 : vector<8x1xf32>
    %21 = vector.broadcast %20 : vector<8x1xf32> to vector<8x8xf32>
    %22 = arith.mulf %15, %21 : vector<8x8xf32>
    %cst_10 = arith.constant dense<0.000000e+00> : vector<8x32xf32>
    %23 = tpu.matmul %22, %9, %cst_10 {dimension_numbers = #tpu.dot_dimension_numbers<[1], [0], [0], [1], [0, 0, 1, 1], [], []>} : vector<8x8xf32>, vector<8x32xf32>, vector<8x32xf32> -> vector<8x32xf32>
    %24 = vector.shape_cast %23 : vector<8x32xf32> to vector<1x8x32xf32>
    %c0_11 = arith.constant 0 : index
    %c0_12 = arith.constant 0 : index
    %c0_13 = arith.constant 0 : index
    %25 = vector.load %arg4[%c0_11, %c0_12, %c0_13] : memref<1x8x32xf32, #tpu.memory_space<vmem>>, vector<1x8x32xf32>
    tpu.vector_store %arg4[%c0_11, %c0_12, %c0_13], %24 {strides = array<i32>} : memref<1x8x32xf32, #tpu.memory_space<vmem>>, vector<1x8x32xf32>,
    return
  }
  func.func @transform_0(%arg0: i32) -> (i32, i32, i32) {
    %c0_i32 = arith.constant 0 : i32
    %c0_i32_0 = arith.constant 0 : i32
    %c0_i32_1 = arith.constant 0 : i32
    return %arg0, %c0_i32, %c0_i32_0 : i32, i32, i32
  }
  func.func @transform_1(%arg0: i32) -> (i32, i32) {
    %c0_i32 = arith.constant 0 : i32
    %c0_i32_0 = arith.constant 0 : i32
    %c0_i32_1 = arith.constant 0 : i32
    return %c0_i32, %c0_i32_0 : i32, i32
  }
  func.func @transform_2(%arg0: i32) -> (i32, i32) {
    %c0_i32 = arith.constant 0 : i32
    %c0_i32_0 = arith.constant 0 : i32
    %c0_i32_1 = arith.constant 0 : i32
    return %c0_i32, %c0_i32_0 : i32, i32
  }
  func.func @transform_3(%arg0: i32) -> (i32, i32, i32) {
    %c0_i32 = arith.constant 0 : i32
    %c0_i32_0 = arith.constant 0 : i32
    %c0_i32_1 = arith.constant 0 : i32
    return %arg0, %c0_i32, %c0_i32_0 : i32, i32, i32
  }
}

</mosaic_0001>

<bundles_post_ra>
// kernel: tpu_custom_call.1
= control target key start
LH: loop header
LB: loop body
LE: loop exit
PB: predicated region body
PF: predicated region fallthrough
CT: control target
= control target key end

     0   :  { %8 = vsyncpa [#allocation3], 0  ;;  %s1000_s0 = inlined_call_operand.hbm [shape: f32[2,8,32], index: 0, kind: input, shape index: {}]   ;;  %s1001_s1 = inlined_call_operand.hbm [shape: f32[32,96], index: 1, kind: input, shape index: {}]   ;;  %s1002_s2 = inlined_call_operand.vmem [shape: f32[1,96], index: 2, kind: input, shape index: {}]   ;;  %s1003_s3 = inlined_call_operand.hbm [shape: f32[2,8,32], index: 3, kind: output, shape index: {}]  }
   0x1   :  { %10 = vsyncpa [#allocation3 + $0x1], 0 }
   0x2   :  { %11 = vsyncpa [#allocation6], 0 }
   0x3   :  { %12 = vsyncpa [#allocation4], 0 }
   0x4   :  { %14 = vsyncpa [#allocation4 + $0x1], 0  ;;  %s817_s12 = smov 0   ;;  %s819_s13 = smov 0  }
   0x5   :  { %s821_s14 = smov 0   ;;  %s823_s15 = smov 0  }
   0x6 LB: > { %s838_s16 = sadd.s32 4294967295, %s786_s15   ;;  %s548_s17 = sadd.s32 4294967294, %s786_s15   ;;  %s786_s15 = sphi %s823_s15, %s1025_s15   ;;  %s782_s14 = sphi %s821_s14, %s1024_s14   ;;  %s778_s13 = sphi %s819_s13, %s1023_s13   ;;  %s774_s12 = sphi %s817_s12, %s1022_s12  }
   0x7   : > { %p40_p0 = scmp.ne.s32.totalorder %s778_s13, %s774_s12  ;;  %p1004_p1 = scmp.eq.s32.totalorder %s838_s16, 0 }
   0x8   : > { %p112_p3 = scmp.eq.s32.totalorder %s548_s17, 1  ;;  %p549_p5 = scmp.ge.s32.totalorder %s786_s15, 1 }
   0x9   : > { %p847_p4 = por %p1004_p1, %p40_p0  ;;  %p119_p7 = scmp.lt.s32.totalorder %s786_s15, 3 }
   0xa   : > { %p852_p6 = por %p112_p3, %p40_p0  ;;  %s788_s21 = smov [#allocation5]  }
   0xb   : > { %s1008_s18 = scalar_select %p847_p4, 1, 0 }
   0xc   : > { %s1009_s19 = scalar_select %p852_p6, 1, 0 }
   0xd   : > { %p857_p8 = pnand %p549_p5, %p119_p7  ;;  %s131_s22 = sshll.u32 %s788_s21, 4  ;;  %s132_s22 = int_to_ptr.vmem [resolvable:$true] %s131_s22 }
   0xe   : > { %s871_s24 = sadd.s32 1, %s786_s15   ;;  %s27_s25 = sadd.s32 1, %s782_s14 }
   0xf   : > { %s1010_s20 = scalar_select %p857_p8, 1, 0 }
  0x10   : > { %p605_p9 = pneg %p857_p8  ;;  %s24_s26 = ssub.s32 %s786_s15, %s871_s24 }
  0x11   : > { %s675_s27 = scalar_lea.vmem %s132_s22, 512  ;;  %p683_p5 = scmp.lt.s32.totalorder %s132_s22, %s132_s22 }
  0x12   : > { %p866_p11 = pnand %p605_p9, %p1004_p1  ;;  %p676_p13 = scmp.ne.s32.totalorder %s132_s22, %s675_s27 }
  0x13   : > { %p684_p7 = scmp.lt.s32.totalorder %s675_s27, %s675_s27 }
  0x14   : > { %p666_p12 = pneg %p866_p11 }
  0x15   : > { %p685_p10 = por %p684_p7, %p683_p5 }
  0x16   : > { %p678_p0 = pnand %p676_p13, %p666_p12 }
  0x18   : > { %p679_p3 = pneg %p678_p0 }
  0x1a   : > { %p686_p2 = pnand %p685_p10, %p679_p3 }
  0x1c   : > { %689 = shalt.err (!%p686_p2)
}
  0x1d   : > { %s789_s28 = smov 128   ;;  %s790_s29 = smov 8  }
  0x1e   : > { %608 = dma.hbm_to_vmem [thread:$0]  (!%p866_p11), %s1001_s1, 512, %s132_s22, [#allocation6], %s789_s28, %s789_s28, %s790_s29  }
  0x1f   : > { %p25_p9 = scmp.eq.s32.totalorder %s24_s26, 0  ;;  %p34_p12 = scmp.ne.s32.totalorder %s782_s14, %s778_s13 }
  0x20   : > { %p35_p10 = scmp.eq.s32.totalorder %s786_s15, 0  ;;  %p618_p2 = scmp.lt.s32.totalorder %s786_s15, 2 }
  0x21   : > { %s888_s5 = scalar_select %p25_p9, %s782_s14, %s27_s25  }
  0x22   : > { %p36_p13 = por %p35_p10, %p34_p12  ;;  %p1012_p0 = scmp.eq.s32.totalorder %s838_s16, 1 }
  0x23   : > { %s148_s7 = sand.u32 1, %s782_s14   ;;  %s553_s8 = sshll.u32 %s786_s15, 7 }
  0x24   : > { %p892_p3 = por %p1012_p0, %p34_p12  ;;  %s552_s9 = sshll.u32 %s148_s7, 3 }
  0x25   : > { %s901_s17 = scalar_lea.hbm %s1000_s0, %s553_s8  ;;  %s152_s21 = scalar_lea.vmem [#allocation2], %s552_s9 }
  0x26   : > { %s1013_s6 = scalar_select %p892_p3, 1, 0 }
  0x27   : > { %s159_s22 = sshll.u32 %s152_s21, 4  ;;  %p903_p11 = pnand %p618_p2, %p36_p13  ;;  %s160_s22 = int_to_ptr.vmem [resolvable:$true] %s159_s22 }
  0x28   : > { %s149_s25 = scalar_lea.sflag [#allocation3], %s148_s7  ;;  %s690_s26 = scalar_lea.hbm %s901_s17, 128 }
  0x29   : > { %p691_p5 = scmp.ne.s32.totalorder %s901_s17, %s690_s26  ;;  %p692_p7 = pneg %p903_p11 }
  0x2a   : > { %s695_s29 = scalar_lea.hbm %s1000_s0, 256  ;;  %p696_p10 = scmp.lt.s32.totalorder %s901_s17, %s1000_s0 }
  0x2b   : > { %p693_p9 = pnand %p692_p7, %p691_p5  ;;  %p697_p2 = scmp.lt.s32.totalorder %s695_s29, %s690_s26 }
  0x2d   : > { %p694_p12 = pneg %p693_p9  ;;  %p698_p13 = por %p697_p2, %p696_p10 }
  0x2f   : > { %p699_p0 = pnand %p698_p13, %p694_p12 }
  0x31   : > { %702 = shalt.err (!%p699_p0)
}
  0x32   : > { %s703_s8 = scalar_lea.vmem %s160_s22, 128  ;;  %s791_s7 = smov [#allocation2]  }
  0x33   : > { %p704_p1 = scmp.ne.s32.totalorder %s160_s22, %s703_s8  ;;  %s708_s9 = sshll.u32 %s791_s7, 4  ;;  %s709_s9 = int_to_ptr.vmem [resolvable:$false] %s708_s9 }
  0x34   : > { %s710_s10 = scalar_lea.vmem %s709_s9, 256  ;;  %p711_p5 = scmp.lt.s32.totalorder %s160_s22, %s709_s9 }
  0x35   : > { %p706_p6 = pnand %p704_p1, %p692_p7  ;;  %p712_p9 = scmp.lt.s32.totalorder %s710_s10, %s703_s8 }
  0x37   : > { %p707_p3 = pneg %p706_p6  ;;  %p713_p4 = por %p712_p9, %p711_p5 }
  0x39   : > { %p714_p8 = pnand %p713_p4, %p707_p3 }
  0x3b   : > { %717 = shalt.err (!%p714_p8)
}
  0x3c   : > { %612 = dma.hbm_to_vmem [thread:$0]  (!%p903_p11), %s901_s17, 128, %s160_s22, %s149_s25  }
  0x3d   : > { %p1015_p12 = scmp.ne.s32.totalorder %s1010_s20, 0 }
  0x3e   : > { %s924_s11 = sand.u32 (!%p1015_p12), 1, %s778_s13   ;;  %p1016_p1 = scmp.ne.s32.totalorder (!%p1015_p12), %s1008_s18, 0 }
  0x3f   : > { %168 = sbr.rel (%p1015_p12) target bundleno = 1109 (0x455), region = 32  ;;  %s555_s21 = sshll.u32 (!%p1015_p12), %s924_s11, 3 }
  0x40   : > { %s171_s26 = scalar_lea.sflag (!%p1015_p12), [#allocation3], %s924_s11  ;;  %s174_s27 = scalar_lea.vmem (!%p1015_p12), [#allocation2], %s555_s21 }
  0x44   : > { %761 = dma.done.wait (%p1016_p1), %s171_s26, 128  }
  0x45   : > { %763 = vsyncadd (%p1016_p1), %s171_s26, 4294967168  ;;  %p1017_p4 = scmp.eq.s32.totalorder %s838_s16, 0 }
  0x47   : > { %765 = dma.done.wait (%p1017_p4), [#allocation6], 512   ;;  %p1018_p6 = pmov %p1017_p4 }
  0x48   : > { %v792_v0 = vmov 0.0   ;;  %vm793_vm0 = vmmov 0   ;;  %v205_v1 = vld [vmem:[#allocation5 + $0x18] sm:$0xff]  ;;  %v204_v2 = vld [vmem:[#allocation5 + $0x10] sm:$0xff]  ;;  %v203_v3 = vld [vmem:[#allocation5 + $0x8] sm:$0xff]  ;;  %vm213_vm1 = vcmask 261120  }
  0x49   : > { %767 = vsyncadd (%p1018_p6), [#allocation6], 4294966784  ;;  %576 = vmatprep.subr.mxu0 %v792_v0  ;;  %584 = vmatprep.mubr.msk.f32.mxu0 %vm793_vm0, %v792_v0  ;;  %v202_v4 = vld [vmem:[#allocation5] sm:$0xff]  ;;  %v201_v5 = vld [vmem:[%s174_s27] sm:$0xff]  ;;  %s794_s17 = smov 96   ;;  %vm364_vm2 = vcmask 64512  }
  0x4a   : > { %587 = vmatprep.subr.mxu1 %v792_v0  ;;  %589 = vmatprep.mubr.msk.f32.mxu1 %vm793_vm0, %v792_v0  ;;  %v558_v6 = vld [vmem:[%s1002_s2] ss:$0 sm:$0xff]  ;;  %s795_s22 = smov 64   ;;  %s564_s23 = sshll.u32 %s838_s16, 7 }
  0x4b   : > { %577 = vmatpush3.msra.mxu0 %v205_v1  ;;  %s200_s25 = scalar_lea.vmem [#allocation7], %s555_s21  ;;  %s956_s4 = scalar_lea.hbm %s1003_s3, %s564_s23 }
  0x4c   : > { %578 = vmatprep.subr.mxu0 %v792_v0  ;;  %s468_s28 = sshll.u32 %s200_s25, 4  ;;  %s455_s8 = scalar_lea.sflag [#allocation4], %s924_s11  ;;  %s958_s28 = int_to_ptr.vmem [resolvable:$true] %s468_s28 }
  0x4d   : > { %579 = vmatpush3.msra.mxu0 %v204_v2  ;;  %s718_s7 = scalar_lea.vmem %s958_s28, 128  ;;  %p1019_p3 = scmp.ne.s32.totalorder %s1013_s6, 0 }
  0x4e   : > { %580 = vmatprep.subr.mxu0 %v792_v0  ;;  %p719_p8 = scmp.ne.s32.totalorder %s958_s28, %s718_s7  ;;  %s796_s16 = smov [#allocation7]  }
  0x4f   : > { %581 = vmatpush3.msra.mxu0 %v203_v3  ;;  %s722_s9 = sshll.u32 %s796_s16, 4  ;;  %s723_s9 = int_to_ptr.vmem [resolvable:$false] %s722_s9 }
  0x50   : > { %582 = vmatprep.subr.mxu0 %v792_v0  ;;  %p720_p11 = pnand %p719_p8, %p1019_p3  ;;  %s724_s10 = scalar_lea.vmem %s723_s9, 256 }
  0x51   : > { %583 = vmatpush3.msra.mxu0 %v202_v4  ;;  %p725_p10 = scmp.lt.s32.totalorder %s958_s28, %s723_s9  ;;  %p726_p2 = scmp.lt.s32.totalorder %s724_s10, %s718_s7 }
  0x52   : > { %585 = vmatmul.mubr.msk.f32.vlgmr.msra.gmra.mxu0 %vm213_vm1, %v201_v5  ;;  %p721_p7 = pneg %p720_p11 }
  0x53   : > { %p727_p13 = por %p726_p2, %p725_p10 }
  0x55   : > { %p728_p0 = pnand %p727_p13, %p721_p7 }
 0x112   : > { %v283_v7 = vpop.f32.mrf.mxu0 }
 0x113   : > { %v284_v8 = vadd.f32 %v558_v6, %v283_v7 }
 0x114   : > { %v586_v9 = vpop.f32.mrf.mxu0 }
 0x115   : > { %288 = vrot.lane.b32.xlu0 %v284_v8, %s794_s17 }
 0x187   : > { %v289_v10 = vpop.permute.xlu0 %288 }
 0x188   : > { %588 = vmatpush3.xpose.msk.msra.mxu1 %vm213_vm1, %v289_v10 }
 0x189   : > { %592 = vmatprep.subr.mxu1 %v792_v0 }
 0x18b   : > { %590 = vmatmul.mubr.msk.f32.vlgmr.msra.gmra.mxu1 %vm213_vm1, %v284_v8 }
 0x18c   : > { %594 = vmatprep.mubr.msk.f32.mxu1 %vm793_vm0, %v792_v0 }
 0x24b   : > { %v360_v11 = vpop.f32.mrf.mxu1 }
 0x24c   : > { %v365_v12 = vsel %vm364_vm2, %v360_v11, -inf }
 0x24d   : > { %366 = vmax.xlane.f32.xlu0 %v365_v12  ;;  %v591_v13 = vpop.f32.mrf.mxu1 }
 0x2d6   : > { %v367_v14 = vpop.xlane.xlu0 %366 }
 0x2d7   : > { %v368_v15 = vsub.f32 %v360_v11, %v367_v14 }
 0x2d9   : > { %v369_v16 = vmul.f32 1.442695, %v368_v15 }
 0x2db   : > { %660 = vpow2.f32 %v369_v16 }
 0x2e8   : > { %v661_v17 = vpop.eup %660 }
 0x2e9   : > { %v371_v18 = vsel %vm364_vm2, %v661_v17, 0.0 }
 0x2ea   : > { %372 = vadd.xlane.f32.xlu1 %v371_v18 }
 0x2fb   : > { %377 = vrot.lane.b32.xlu1 %v284_v8, %s795_s22 }
 0x373   : > { %v373_v19 = vpop.xlane.xlu1 %372 }
 0x374   : > { %662 = vrcp.f32 %v373_v19 }
 0x377   : > { %v378_v20 = vpop.permute.xlu1 %377 }
 0x378   : > { %593 = vmatpush3.msra.mxu1 %v378_v20 }
 0x381   : > { %v663_v21 = vpop.eup %662 }
 0x382   : > { %v375_v22 = vmul.f32 0.17677669, %v663_v21 }
 0x384   : > { %v376_v23 = vmul.f32 %v661_v17, %v375_v22 }
 0x386   : > { %595 = vmatmul.mubr.msk.f32.vlgmr.msra.gmra.mxu1 %vm364_vm2, %v376_v23 }
 0x446   : > { %v449_v24 = vpop.f32.mrf.mxu1 }
 0x447   : > { %453 = vst.msk [vmem:[%s200_s25] sm:$0xff] %vm213_vm1, %v449_v24 }
 0x448   : > { %v596_v25 = vpop.f32.mrf.mxu1 }
 0x449   : > { %731 = shalt.err (!%p728_p0)
}
 0x44a   : > { %s732_s21 = scalar_lea.hbm %s956_s4, 128  ;;  %s736_s27 = scalar_lea.hbm %s1003_s3, 256 }
 0x44b   : > { %p733_p5 = scmp.ne.s32.totalorder %s956_s4, %s732_s21  ;;  %p737_p1 = scmp.lt.s32.totalorder %s956_s4, %s1003_s3 }
 0x44c   : > { %p738_p4 = scmp.lt.s32.totalorder %s736_s27, %s732_s21 }
 0x44d   : > { %p734_p9 = pnand %p733_p5, %p1019_p3 }
 0x44e   : > { %p739_p6 = por %p738_p4, %p737_p1 }
 0x44f   : > { %p735_p12 = pneg %p734_p9 }
 0x451   : > { %p740_p8 = pnand %p739_p6, %p735_p12 }
 0x453   : > { %743 = shalt.err (!%p740_p8)
}
 0x454   : > { %603 = dma.vmem_to_hbm [thread:$0]  (%p1019_p3), %s958_s28, 128, %s956_s4, %s455_s8  }
 0x455 PF: > { %s480_s17 = sand.u32 1, %s774_s12   ;;  %p1020_p11 = scmp.ne.s32.totalorder %s1009_s19, 0 }
 0x456   : > { %p1021_p7 = scmp.ge.s32.totalorder %s786_s15, 2  ;;  %s481_s22 = scalar_lea.sflag [#allocation4], %s480_s17 }
 0x458   : > { %p614_p10 = pnand %p1021_p7, %p1020_p11 }
 0x45a   : > { %p615_p2 = pneg %p614_p10 }
 0x45c   : > { %769 = dma.done.wait (%p615_p2), %s481_s22, 128  }
 0x45d   : > { %771 = vsyncadd (%p615_p2), %s481_s22, 4294967168  ;;  %p17_p13 = scmp.ge.s32.totalorder %s871_s24, 4   ;;  %s1022_s12 = smov %s778_s13 }
 0x45e   : > { %s1023_s13 = smov %s782_s14  ;;  %s1024_s14 = smov %s888_s5 }
 0x45f   : > { %s1025_s15 = smov %s871_s24  ;;  %19 = sbr.rel (!%p17_p13) target bundleno = 6 (0x6), region = 81 }
 0x464   :  { %486 = vsyncpa [#allocation3], 1 }
 0x465   :  { %488 = vsyncpa [#allocation3 + $0x1], 1 }
 0x466   :  { %489 = vsyncpa [#allocation6], 1 }
 0x467   :  { %490 = vsyncpa [#allocation4], 1 }
 0x468   :  { %492 = vsyncpa [#allocation4 + $0x1], 1 }

</bundles_post_ra>
